<compile_context>
chip_gen: v7x
topology: tpu7x:2x2x1
jax: 0.10.0
libtpu: 0.0.40
codegen_flags: <defaults>
</compile_context>

<pallas_src>
import functools

import jax
import jax.numpy as jnp
from jax import lax
from jax.experimental import pallas as pl
from jax.experimental.pallas import tpu as pltpu


def _round_up(v, m):
    return ((v + m - 1) // m) * m


def _mxu_align():
    """Lane alignment for padded dims: 256 on v6e/v7x (2x256^2 MXU), 128 on v5e and older."""
    try:
        kind = jax.devices()[0].device_kind.lower()
    except Exception:
        return 128
    if "v6" in kind or "v7" in kind:
        return 256
    return 128


def _vmem_limit_bytes():
    """Explicit scoped-VMEM limit: ~75% of physical, capped at 100 MiB (safe on 64 MiB v7x)."""
    try:
        cap = int(pltpu.get_tpu_info().vmem_capacity_bytes)
    except Exception:
        cap = 64 << 20  # conservative default = v7x physical VMEM per TensorCore
    return int(min(100 << 20, cap * 3 // 4))


def _choose_tile_n(n, fea_p, mem_p, itemsize, vmem_limit, prefer=512):
    """Token-tile size: multiple of 16, VMEM-budget aware, >=2 grid steps when possible."""
    tile = min(prefer, _round_up(n, 16))
    if n > 16:
        # Keep at least 2 grid steps so v7x megacore can split tokens across both TCs
        # (also limits wasted padded-row compute when n < prefer).
        tile = min(tile, _round_up(pl.cdiv(n, 2), 16))

    def fits(t):
        weights = 2 * mem_p * fea_p * itemsize        # resident W + W^T (single-buffered)
        io = 2 * 2 * t * fea_p * itemsize             # x + out tiles, double-buffered
        io += 2 * t * mem_p * itemsize                # att tile, double-buffered
        temps = 3 * t * mem_p * 4                     # f32 logits / e / att temporaries
        return weights + io + temps <= 0.7 * vmem_limit

    while tile > 16 and not fits(tile):
        tile = max(16, _round_up(tile // 2, 16))
    return tile


def _memory_unit_kernel(x_ref, wt_ref, w_ref, out_ref, att_ref, *,
                        shrink_thres, mem_dim, exact_shrink):
    x = x_ref[...]                                   # [TN, Fp]
    wt = wt_ref[...]                                 # [Fp, Mp]  resident W^T (pre-transposed)
    w = w_ref[...]                                   # [Mp, Fp]  resident W

    # logits = x @ W^T, canonical contraction -> no in-kernel transpose of the weight.
    logits = jnp.dot(x, wt, preferred_element_type=jnp.float32)   # [TN, Mp] f32

    # Mask padded memory slots (zero weight rows) so softmax ignores them.
    m_pad = logits.shape[1]
    if m_pad != mem_dim:
        col = lax.broadcasted_iota(jnp.int32, logits.shape, 1)
        logits = jnp.where(col < mem_dim, logits, -jnp.inf)

    mx = jnp.max(logits, axis=1, keepdims=True)
    e = jnp.exp(logits - mx)                         # [TN, Mp]
    denom = jnp.sum(e, axis=1, keepdims=True)        # softmax denominator, >= 1

    if exact_shrink:
        # Op-for-op mirror of the PyTorch forward (incl. the 1e-12 softened hard-shrink).
        att = e * pl.reciprocal(denom, approx=False)
        if shrink_thres > 0.0:
            shifted = att - shrink_thres
            att = (jnp.maximum(shifted, 0.0) * att
                   * pl.reciprocal(jnp.abs(shifted) + 1e-12, approx=False))
        l1 = jnp.maximum(jnp.sum(att, axis=1, keepdims=True), 1e-12)
        att = att * pl.reciprocal(l1, approx=False)
    else:
        # Folded fast path: att/denom - thres > 0  <=>  e > thres * denom, and the final
        # L1 normalization makes the softmax divide redundant.  One select + one scale.
        if shrink_thres > 0.0:
            e = jnp.where(e > shrink_thres * denom, e, 0.0)
            denom = jnp.maximum(jnp.sum(e, axis=1, keepdims=True), 1e-12)
        att = e * pl.reciprocal(denom, approx=False)

    att_ref[...] = att.astype(att_ref.dtype)

    # output = att @ W  (padded slots have att == 0, contribute nothing)
    out = jnp.dot(att.astype(w.dtype), w, preferred_element_type=jnp.float32)  # [TN, Fp]
    out_ref[...] = out.astype(out_ref.dtype)


class MemoryUnitPallas:
    """Pallas-TPU MemoryUnit forward.  Weight padding / transpose is done once at init."""

    def __init__(self, weight, shrink_thres=0.0025, tile_n=512, exact_shrink=False):
        self.mem_dim, self.fea_dim = weight.shape
        self.shrink_thres = float(shrink_thres)
        self.exact_shrink = bool(exact_shrink)
        self.tile_n_pref = int(tile_n)

        align = _mxu_align()
        self.fea_p = _round_up(self.fea_dim, align)
        self.mem_p = _round_up(self.mem_dim, align)

        w_p = weight
        if (self.mem_p, self.fea_p) != tuple(weight.shape):
            w_p = jnp.pad(weight, ((0, self.mem_p - self.mem_dim),
                                   (0, self.fea_p - self.fea_dim)))
        # Padded weight and its transpose, computed once (hoisted out of the forward).
        self.w_p = jax.device_put(w_p)
        self.wt_p = jax.device_put(jnp.transpose(w_p))

        self.vmem_limit = _vmem_limit_bytes()
        self._single_buffer_ok = None   # learned on first call (pipeline_mode support)

    def _build(self, n_p, tile_n, single_buffer_w, x_dtype):
        kernel = functools.partial(
            _memory_unit_kernel,
            shrink_thres=self.shrink_thres,
            mem_dim=self.mem_dim,
            exact_shrink=self.exact_shrink,
        )
        # Weight block never changes (index_map -> (0,0)); request a single VMEM buffer.
        w_kw = dict(pipeline_mode=pl.Buffered(1)) if single_buffer_w else {}
        fea_p, mem_p = self.fea_p, self.mem_p
        return pl.pallas_call(
            kernel,
            out_shape=(
                jax.ShapeDtypeStruct((n_p, fea_p), x_dtype),
                jax.ShapeDtypeStruct((n_p, mem_p), x_dtype),
            ),
            grid_spec=pltpu.PrefetchScalarGridSpec(
                num_scalar_prefetch=0,
                grid=(n_p // tile_n,),
                in_specs=[
                    pl.BlockSpec((tile_n, fea_p), lambda i: (i, 0)),         # x tile, pipelined
                    pl.BlockSpec((fea_p, mem_p), lambda i: (0, 0), **w_kw),  # W^T resident
                    pl.BlockSpec((mem_p, fea_p), lambda i: (0, 0), **w_kw),  # W   resident
                ],
                out_specs=[
                    pl.BlockSpec((tile_n, fea_p), lambda i: (i, 0)),
                    pl.BlockSpec((tile_n, mem_p), lambda i: (i, 0)),
                ],
            ),
            compiler_params=pltpu.CompilerParams(
                dimension_semantics=("parallel",),        # shard N-tiles across TCs (v7x)
                vmem_limit_bytes=self.vmem_limit,
            ),
        )

    def __call__(self, x):
        n, fea_dim = x.shape
        assert fea_dim == self.fea_dim
        itemsize = max(jnp.dtype(x.dtype).itemsize, 4)
        tile_n = _choose_tile_n(n, self.fea_p, self.mem_p, itemsize,
                                self.vmem_limit, prefer=self.tile_n_pref)
        n_p = _round_up(n, tile_n)

        x_p = x
        if (n_p, self.fea_p) != (n, fea_dim):
            x_p = jnp.pad(x, ((0, n_p - n), (0, self.fea_p - fea_dim)))

        candidates = ((True, False) if self._single_buffer_ok is None
                      else (self._single_buffer_ok,))
        last_err = None
        for single in candidates:
            try:
                call = self._build(n_p, tile_n, single, x.dtype)
                out, att = call(x_p, self.wt_p, self.w_p)
                self._single_buffer_ok = single
                return out[:n, :self.fea_dim], att[:n, :self.mem_dim]
            except Exception as e:   # pipeline_mode unsupported -> default double-buffering
                last_err = e
        raise last_err


def memory_unit_forward(x, weight, shrink_thres=0.0025, tile_n=512):
    """Functional wrapper.  For repeated calls with a static weight, build MemoryUnitPallas
    once instead (caches the padded / pre-transposed weight)."""
    return MemoryUnitPallas(weight, shrink_thres, tile_n=tile_n)(x)


def _reference(x, weight, shrink_thres=0.0025):
    """Pure-JAX reference mirroring the PyTorch forward."""
    logits = x @ weight.T
    att = jax.nn.softmax(logits, axis=1)
    if shrink_thres > 0:
        shifted = att - shrink_thres
        att = jnp.maximum(shifted, 0.0) * att / (jnp.abs(shifted) + 1e-12)
    att = att / jnp.maximum(jnp.sum(jnp.abs(att), axis=1, keepdims=True), 1e-12)
    out = att @ weight
    return out, att


if __name__ == "__main__":
    shrink_thres = 0.0025
    key = jax.random.PRNGKey(0)

    # One misaligned config (exercises padding + mem-slot masking) and one aligned config
    # with multiple grid steps (exercises N tiling + resident weight).
    configs = [
        dict(n=50, mem_dim=100, fea_dim=64),
        dict(n=256, mem_dim=128, fea_dim=128),
    ]

    for cfg in configs:
        key, kx, kw = jax.random.split(key, 3)
        n, mem_dim, fea_dim = cfg["n"], cfg["mem_dim"], cfg["fea_dim"]

        # Deterministic init matching reset_parameters: uniform(-stdv, stdv), stdv=1/sqrt(fea_dim)
        stdv = 1.0 / (fea_dim ** 0.5)
        weight = jax.random.uniform(
            kw, (mem_dim, fea_dim), dtype=jnp.float32, minval=-stdv, maxval=stdv)
        x = jax.random.normal(kx, (n, fea_dim), dtype=jnp.float32)

        out_ref, att_ref = _reference(x, weight, shrink_thres)

        # Default (folded fast-math) path.
        mem = MemoryUnitPallas(weight, shrink_thres)
        out, att = mem(x)
        jax.block_until_ready((out, att))
        assert out.shape == (n, fea_dim) and att.shape == (n, mem_dim)
        assert jnp.allclose(out, out_ref, atol=2e-5, rtol=2e-5), f"output mismatch for {cfg}"
        assert jnp.allclose(att, att_ref, atol=2e-5, rtol=2e-5), f"att mismatch for {cfg}"

        # Exact path (op-for-op mirror of the PyTorch forward).
        mem_exact = MemoryUnitPallas(weight, shrink_thres, exact_shrink=True)
        out_e, att_e = mem_exact(x)
        jax.block_until_ready((out_e, att_e))
        assert jnp.allclose(out_e, out_ref, atol=1e-5, rtol=1e-5), f"exact output mismatch {cfg}"
        assert jnp.allclose(att_e, att_ref, atol=1e-5, rtol=1e-5), f"exact att mismatch {cfg}"

    print("KERNEL_OK")
</pallas_src>

<mosaic_0001>
module attributes {stable_mosaic.version = 11 : i64} {
  func.func @_memory_unit_kernel(%arg0: i32, %arg1: memref<32x128xf32, #tpu.memory_space<vmem>>, %arg2: memref<128x128xf32, #tpu.memory_space<vmem>>, %arg3: memref<128x128xf32, #tpu.memory_space<vmem>>, %arg4: memref<32x128xf32, #tpu.memory_space<vmem>>, %arg5: memref<32x128xf32, #tpu.memory_space<vmem>>) attributes {dimension_semantics = [#tpu.dimension_semantics<parallel>], iteration_bounds = array<i64: 2>, scalar_prefetch = 0 : i64, scratch_operands = 0 : i64, tpu.core_type = #tpu.core_type<tc>, window_params = [{transform_indices = @transform_0, window_bounds = array<i64: 32, 128>}, {pipeline_mode = #tpu.pipeline_mode<synchronous>, transform_indices = @transform_1, window_bounds = array<i64: 128, 128>}, {pipeline_mode = #tpu.pipeline_mode<synchronous>, transform_indices = @transform_2, window_bounds = array<i64: 128, 128>}, {transform_indices = @transform_3, window_bounds = array<i64: 32, 128>}, {transform_indices = @transform_4, window_bounds = array<i64: 32, 128>}]} {
    %c0 = arith.constant 0 : index
    %c0_0 = arith.constant 0 : index
    %0 = vector.load %arg1[%c0, %c0_0] : memref<32x128xf32, #tpu.memory_space<vmem>>, vector<32x128xf32>
    %c0_1 = arith.constant 0 : index
    %c0_2 = arith.constant 0 : index
    %1 = vector.load %arg2[%c0_1, %c0_2] : memref<128x128xf32, #tpu.memory_space<vmem>>, vector<128x128xf32>
    %c0_3 = arith.constant 0 : index
    %c0_4 = arith.constant 0 : index
    %2 = vector.load %arg3[%c0_3, %c0_4] : memref<128x128xf32, #tpu.memory_space<vmem>>, vector<128x128xf32>
    %cst = arith.constant dense<0.000000e+00> : vector<32x128xf32>
    %3 = tpu.matmul %0, %1, %cst {dimension_numbers = #tpu.dot_dimension_numbers<[1], [0], [0], [1], [0, 0, 1, 1], [], []>} : vector<32x128xf32>, vector<128x128xf32>, vector<32x128xf32> -> vector<32x128xf32>
    %4 = tpu.iota {dimensions = array<i32: 1>} : vector<32x128xi32>
    %c100_i32 = arith.constant 100 : i32
    %5 = vector.broadcast %c100_i32 : i32 to vector<32x128xi32>
    %6 = arith.cmpi slt, %4, %5 : vector<32x128xi32>
    %cst_5 = arith.constant 0xFF800000 : f32
    %7 = vector.broadcast %cst_5 : f32 to vector<32x128xf32>
    %8 = arith.select %6, %3, %7 : vector<32x128xi1>, vector<32x128xf32>
    %cst_6 = arith.constant dense<0xFF800000> : vector<32xf32>
    %9 = vector.multi_reduction <maximumf>, %8, %cst_6 [1] : vector<32x128xf32> to vector<32xf32>
    %10 = vector.shape_cast %9 : vector<32xf32> to vector<32x1xf32>
    %11 = vector.broadcast %10 : vector<32x1xf32> to vector<32x128xf32>
    %12 = arith.subf %8, %11 : vector<32x128xf32>
    %13 = math.exp %12 : vector<32x128xf32>
    %cst_7 = arith.constant dense<0.000000e+00> : vector<32xf32>
    %14 = vector.multi_reduction <add>, %13, %cst_7 [1] : vector<32x128xf32> to vector<32xf32>
    %15 = vector.shape_cast %14 : vector<32xf32> to vector<32x1xf32>
    %cst_8 = arith.constant 2.500000e-03 : f32
    %16 = vector.broadcast %cst_8 : f32 to vector<32x1xf32>
    %17 = arith.mulf %16, %15 : vector<32x1xf32>
    %18 = vector.broadcast %17 : vector<32x1xf32> to vector<32x128xf32>
    %19 = arith.cmpf ogt, %13, %18 : vector<32x128xf32>
    %cst_9 = arith.constant 0.000000e+00 : f32
    %20 = vector.broadcast %cst_9 : f32 to vector<32x128xf32>
    %21 = arith.select %19, %13, %20 : vector<32x128xi1>, vector<32x128xf32>
    %cst_10 = arith.constant dense<0.000000e+00> : vector<32xf32>
    %22 = vector.multi_reduction <add>, %21, %cst_10 [1] : vector<32x128xf32> to vector<32xf32>
    %23 = vector.shape_cast %22 : vector<32xf32> to vector<32x1xf32>
    %cst_11 = arith.constant 9.99999996E-13 : f32
    %24 = vector.broadcast %cst_11 : f32 to vector<32x1xf32>
    %25 = arith.maximumf %23, %24 : vector<32x1xf32>
    %26 = tpu.reciprocal %25 : vector<32x1xf32> -> vector<32x1xf32>
    %27 = vector.broadcast %26 : vector<32x1xf32> to vector<32x128xf32>
    %28 = arith.mulf %21, %27 : vector<32x128xf32>
    %c0_12 = arith.constant 0 : index
    %c0_13 = arith.constant 0 : index
    %29 = vector.load %arg5[%c0_12, %c0_13] : memref<32x128xf32, #tpu.memory_space<vmem>>, vector<32x128xf32>
    tpu.vector_store %arg5[%c0_12, %c0_13], %28 {strides = array<i32>} : memref<32x128xf32, #tpu.memory_space<vmem>>, vector<32x128xf32>,
    %cst_14 = arith.constant dense<0.000000e+00> : vector<32x128xf32>
    %30 = tpu.matmul %28, %2, %cst_14 {dimension_numbers = #tpu.dot_dimension_numbers<[1], [0], [0], [1], [0, 0, 1, 1], [], []>} : vector<32x128xf32>, vector<128x128xf32>, vector<32x128xf32> -> vector<32x128xf32>
    %c0_15 = arith.constant 0 : index
    %c0_16 = arith.constant 0 : index
    %31 = vector.load %arg4[%c0_15, %c0_16] : memref<32x128xf32, #tpu.memory_space<vmem>>, vector<32x128xf32>
    tpu.vector_store %arg4[%c0_15, %c0_16], %30 {strides = array<i32>} : memref<32x128xf32, #tpu.memory_space<vmem>>, vector<32x128xf32>,
    return
  }
  func.func @transform_0(%arg0: i32) -> (i32, i32) {
    %c0_i32 = arith.constant 0 : i32
    %c0_i32_0 = arith.constant 0 : i32
    return %arg0, %c0_i32 : i32, i32
  }
  func.func @transform_1(%arg0: i32) -> (i32, i32) {
    %c0_i32 = arith.constant 0 : i32
    %c0_i32_0 = arith.constant 0 : i32
    %c0_i32_1 = arith.constant 0 : i32
    return %c0_i32, %c0_i32_0 : i32, i32
  }
  func.func @transform_2(%arg0: i32) -> (i32, i32) {
    %c0_i32 = arith.constant 0 : i32
    %c0_i32_0 = arith.constant 0 : i32
    %c0_i32_1 = arith.constant 0 : i32
    return %c0_i32, %c0_i32_0 : i32, i32
  }
  func.func @transform_3(%arg0: i32) -> (i32, i32) {
    %c0_i32 = arith.constant 0 : i32
    %c0_i32_0 = arith.constant 0 : i32
    return %arg0, %c0_i32 : i32, i32
  }
  func.func @transform_4(%arg0: i32) -> (i32, i32) {
    %c0_i32 = arith.constant 0 : i32
    %c0_i32_0 = arith.constant 0 : i32
    return %arg0, %c0_i32 : i32, i32
  }
}

module attributes {stable_mosaic.version = 11 : i64} {
  func.func @_memory_unit_kernel(%arg0: i32, %arg1: memref<32x128xf32, #tpu.memory_space<vmem>>, %arg2: memref<128x128xf32, #tpu.memory_space<vmem>>, %arg3: memref<128x128xf32, #tpu.memory_space<vmem>>, %arg4: memref<32x128xf32, #tpu.memory_space<vmem>>, %arg5: memref<32x128xf32, #tpu.memory_space<vmem>>) attributes {dimension_semantics = [#tpu.dimension_semantics<parallel>], iteration_bounds = array<i64: 2>, scalar_prefetch = 0 : i64, scratch_operands = 0 : i64, tpu.core_type = #tpu.core_type<tc>, window_params = [{transform_indices = @transform_0, window_bounds = array<i64: 32, 128>}, {pipeline_mode = #tpu.pipeline_mode<synchronous>, transform_indices = @transform_1, window_bounds = array<i64: 128, 128>}, {pipeline_mode = #tpu.pipeline_mode<synchronous>, transform_indices = @transform_2, window_bounds = array<i64: 128, 128>}, {transform_indices = @transform_3, window_bounds = array<i64: 32, 128>}, {transform_indices = @transform_4, window_bounds = array<i64: 32, 128>}]} {
    %c0 = arith.constant 0 : index
    %c0_0 = arith.constant 0 : index
    %0 = vector.load %arg1[%c0, %c0_0] : memref<32x128xf32, #tpu.memory_space<vmem>>, vector<32x128xf32>
    %c0_1 = arith.constant 0 : index
    %c0_2 = arith.constant 0 : index
    %1 = vector.load %arg2[%c0_1, %c0_2] : memref<128x128xf32, #tpu.memory_space<vmem>>, vector<128x128xf32>
    %c0_3 = arith.constant 0 : index
    %c0_4 = arith.constant 0 : index
    %2 = vector.load %arg3[%c0_3, %c0_4] : memref<128x128xf32, #tpu.memory_space<vmem>>, vector<128x128xf32>
    %cst = arith.constant dense<0.000000e+00> : vector<32x128xf32>
    %3 = tpu.matmul %0, %1, %cst {dimension_numbers = #tpu.dot_dimension_numbers<[1], [0], [0], [1], [0, 0, 1, 1], [], []>} : vector<32x128xf32>, vector<128x128xf32>, vector<32x128xf32> -> vector<32x128xf32>
    %4 = tpu.iota {dimensions = array<i32: 1>} : vector<32x128xi32>
    %c100_i32 = arith.constant 100 : i32
    %5 = vector.broadcast %c100_i32 : i32 to vector<32x128xi32>
    %6 = arith.cmpi slt, %4, %5 : vector<32x128xi32>
    %cst_5 = arith.constant 0xFF800000 : f32
    %7 = vector.broadcast %cst_5 : f32 to vector<32x128xf32>
    %8 = arith.select %6, %3, %7 : vector<32x128xi1>, vector<32x128xf32>
    %cst_6 = arith.constant dense<0xFF800000> : vector<32xf32>
    %9 = vector.multi_reduction <maximumf>, %8, %cst_6 [1] : vector<32x128xf32> to vector<32xf32>
    %10 = vector.shape_cast %9 : vector<32xf32> to vector<32x1xf32>
    %11 = vector.broadcast %10 : vector<32x1xf32> to vector<32x128xf32>
    %12 = arith.subf %8, %11 : vector<32x128xf32>
    %13 = math.exp %12 : vector<32x128xf32>
    %cst_7 = arith.constant dense<0.000000e+00> : vector<32xf32>
    %14 = vector.multi_reduction <add>, %13, %cst_7 [1] : vector<32x128xf32> to vector<32xf32>
    %15 = vector.shape_cast %14 : vector<32xf32> to vector<32x1xf32>
    %cst_8 = arith.constant 2.500000e-03 : f32
    %16 = vector.broadcast %cst_8 : f32 to vector<32x1xf32>
    %17 = arith.mulf %16, %15 : vector<32x1xf32>
    %18 = vector.broadcast %17 : vector<32x1xf32> to vector<32x128xf32>
    %19 = arith.cmpf ogt, %13, %18 : vector<32x128xf32>
    %cst_9 = arith.constant 0.000000e+00 : f32
    %20 = vector.broadcast %cst_9 : f32 to vector<32x128xf32>
    %21 = arith.select %19, %13, %20 : vector<32x128xi1>, vector<32x128xf32>
    %cst_10 = arith.constant dense<0.000000e+00> : vector<32xf32>
    %22 = vector.multi_reduction <add>, %21, %cst_10 [1] : vector<32x128xf32> to vector<32xf32>
    %23 = vector.shape_cast %22 : vector<32xf32> to vector<32x1xf32>
    %cst_11 = arith.constant 9.99999996E-13 : f32
    %24 = vector.broadcast %cst_11 : f32 to vector<32x1xf32>
    %25 = arith.maximumf %23, %24 : vector<32x1xf32>
    %26 = tpu.reciprocal %25 : vector<32x1xf32> -> vector<32x1xf32>
    %27 = vector.broadcast %26 : vector<32x1xf32> to vector<32x128xf32>
    %28 = arith.mulf %21, %27 : vector<32x128xf32>
    %c0_12 = arith.constant 0 : index
    %c0_13 = arith.constant 0 : index
    %29 = vector.load %arg5[%c0_12, %c0_13] : memref<32x128xf32, #tpu.memory_space<vmem>>, vector<32x128xf32>
    tpu.vector_store %arg5[%c0_12, %c0_13], %28 {strides = array<i32>} : memref<32x128xf32, #tpu.memory_space<vmem>>, vector<32x128xf32>,
    %cst_14 = arith.constant dense<0.000000e+00> : vector<32x128xf32>
    %30 = tpu.matmul %28, %2, %cst_14 {dimension_numbers = #tpu.dot_dimension_numbers<[1], [0], [0], [1], [0, 0, 1, 1], [], []>} : vector<32x128xf32>, vector<128x128xf32>, vector<32x128xf32> -> vector<32x128xf32>
    %c0_15 = arith.constant 0 : index
    %c0_16 = arith.constant 0 : index
    %31 = vector.load %arg4[%c0_15, %c0_16] : memref<32x128xf32, #tpu.memory_space<vmem>>, vector<32x128xf32>
    tpu.vector_store %arg4[%c0_15, %c0_16], %30 {strides = array<i32>} : memref<32x128xf32, #tpu.memory_space<vmem>>, vector<32x128xf32>,
    return
  }
  func.func @transform_0(%arg0: i32) -> (i32, i32) {
    %c0_i32 = arith.constant 0 : i32
    %c0_i32_0 = arith.constant 0 : i32
    return %arg0, %c0_i32 : i32, i32
  }
  func.func @transform_1(%arg0: i32) -> (i32, i32) {
    %c0_i32 = arith.constant 0 : i32
    %c0_i32_0 = arith.constant 0 : i32
    %c0_i32_1 = arith.constant 0 : i32
    return %c0_i32, %c0_i32_0 : i32, i32
  }
  func.func @transform_2(%arg0: i32) -> (i32, i32) {
    %c0_i32 = arith.constant 0 : i32
    %c0_i32_0 = arith.constant 0 : i32
    %c0_i32_1 = arith.constant 0 : i32
    return %c0_i32, %c0_i32_0 : i32, i32
  }
  func.func @transform_3(%arg0: i32) -> (i32, i32) {
    %c0_i32 = arith.constant 0 : i32
    %c0_i32_0 = arith.constant 0 : i32
    return %arg0, %c0_i32 : i32, i32
  }
  func.func @transform_4(%arg0: i32) -> (i32, i32) {
    %c0_i32 = arith.constant 0 : i32
    %c0_i32_0 = arith.constant 0 : i32
    return %arg0, %c0_i32 : i32, i32
  }
}

</mosaic_0001>

<bundles_post_ra>
// kernel: tpu_custom_call.1
= control target key start
LH: loop header
LB: loop body
LE: loop exit
PB: predicated region body
PF: predicated region fallthrough
CT: control target
= control target key end

     0   :  { %10 = vsyncpa [#allocation3], 0  ;;  %s1515_s0 = inlined_call_operand.hbm [shape: f32[64,128], index: 0, kind: input, shape index: {}]   ;;  %s1516_s1 = inlined_call_operand.hbm [shape: f32[128,128], index: 1, kind: input, shape index: {}]   ;;  %s1517_s2 = inlined_call_operand.hbm [shape: f32[128,128], index: 2, kind: input, shape index: {}]   ;;  %s1518_s3 = inlined_call_operand.hbm [shape: f32[64,128], index: 3, kind: output, shape index: {0}]   ;;  %s1519_s4 = inlined_call_operand.hbm [shape: f32[64,128], index: 4, kind: output, shape index: {1}]  }
   0x1   :  { %12 = vsyncpa [#allocation3 + $0x1], 0 }
   0x2   :  { %13 = vsyncpa [#allocation6], 0 }
   0x3   :  { %14 = vsyncpa [#allocation4], 0 }
   0x4   :  { %16 = vsyncpa [#allocation4 + $0x1], 0 }
   0x5   :  { %17 = vsyncpa [#allocation10], 0 }
   0x6   :  { %19 = vsyncpa [#allocation10 + $0x1], 0  ;;  %s1220_s15 = smov 0   ;;  %s1222_s16 = smov 0  }
   0x7   :  { %s1224_s17 = smov 0   ;;  %s1226_s18 = smov 0  }
   0x8 LB: > { %s1241_s19 = sadd.s32 4294967295, %s1184_s18   ;;  %s699_s20 = sadd.s32 4294967294, %s1184_s18   ;;  %s1184_s18 = sphi %s1226_s18, %s1539_s18   ;;  %s1180_s17 = sphi %s1224_s17, %s1538_s17   ;;  %s1176_s16 = sphi %s1222_s16, %s1537_s16   ;;  %s1172_s15 = sphi %s1220_s15, %s1536_s15  }
   0x9   : > { %p45_p0 = scmp.ne.s32.totalorder %s1176_s16, %s1172_s15  ;;  %p1520_p1 = scmp.eq.s32.totalorder %s1241_s19, 0 }
   0xa   : > { %p117_p3 = scmp.eq.s32.totalorder %s699_s20, 1  ;;  %p700_p5 = scmp.ge.s32.totalorder %s1184_s18, 1 }
   0xb   : > { %p1250_p4 = por %p1520_p1, %p45_p0  ;;  %p150_p7 = scmp.lt.s32.totalorder %s1184_s18, 3 }
   0xc   : > { %p1255_p6 = por %p117_p3, %p45_p0  ;;  %s1186_s24 = smov [#allocation5]  }
   0xd   : > { %s1523_s21 = scalar_select %p1250_p4, 1, 0 }
   0xe   : > { %s1524_s22 = scalar_select %p1255_p6, 1, 0 }
   0xf   : > { %p1260_p8 = pnand %p700_p5, %p150_p7  ;;  %s162_s25 = sshll.u32 %s1186_s24, 4  ;;  %s1264_s25 = int_to_ptr.vmem [resolvable:$true] %s162_s25 }
  0x10   : > { %s1187_s27 = smov [#allocation7]   ;;  %s996_s5 = scalar_lea.hbm %s1516_s1, 2048 }
  0x11   : > { %p918_p9 = pneg %p1260_p8  ;;  %s175_s28 = sshll.u32 %s1187_s27, 4  ;;  %s1275_s28 = int_to_ptr.vmem [resolvable:$true] %s175_s28 }
  0x12   : > { %p997_p12 = scmp.ne.s32.totalorder %s1516_s1, %s996_s5  ;;  %p1003_p5 = scmp.lt.u32.totalorder %s996_s5, %s1516_s1 }
  0x13   : > { %p1271_p11 = pnand %p918_p9, %p1520_p1 }
  0x15   : > { %p998_p13 = pneg %p1271_p11 }
  0x17   : > { %p999_p0 = pnand %p998_p13, %p997_p12 }
  0x19   : > { %p1000_p3 = pneg %p999_p0 }
  0x1b   : > { %p1005_p7 = pnand %p1003_p5, %p1000_p3 }
  0x1d   : > { %1008 = shalt.err (!%p1005_p7)
}
  0x1e   : > { %s1009_s10 = scalar_lea.vmem %s1264_s25, 2048  ;;  %p1017_p2 = scmp.lt.s32.totalorder %s1264_s25, %s1264_s25 }
  0x1f   : > { %p1010_p9 = scmp.ne.s32.totalorder %s1264_s25, %s1009_s10  ;;  %p1018_p12 = scmp.lt.s32.totalorder %s1009_s10, %s1009_s10 }
  0x21   : > { %p1012_p10 = pnand %p1010_p9, %p998_p13  ;;  %p1019_p0 = por %p1018_p12, %p1017_p2 }
  0x23   : > { %p1013_p1 = pneg %p1012_p10 }
  0x25   : > { %p1020_p6 = pnand %p1019_p0, %p1013_p1 }
  0x27   : > { %1023 = shalt.err (!%p1020_p6)
}
  0x28   : > { %s1188_s11 = smov 128   ;;  %s1189_s12 = smov 8  }
  0x29   : > { %921 = dma.hbm_to_vmem [thread:$0]  (!%p1271_p11), %s1516_s1, 2048, %s1264_s25, [#allocation6], %s1188_s11, %s1188_s11, %s1189_s12  }
  0x2a   : > { %s1024_s27 = scalar_lea.hbm %s1517_s2, 2048 }
  0x2b   : > { %p1025_p1 = scmp.ne.s32.totalorder %s1517_s2, %s1024_s27  ;;  %p1031_p10 = scmp.lt.u32.totalorder %s1024_s27, %s1517_s2 }
  0x2d   : > { %p1027_p2 = pnand %p1025_p1, %p998_p13 }
  0x2f   : > { %p1028_p6 = pneg %p1027_p2 }
  0x31   : > { %p1033_p3 = pnand %p1031_p10, %p1028_p6 }
  0x33   : > { %1036 = shalt.err (!%p1033_p3)
}
  0x34   : > { %s1037_s25 = scalar_lea.vmem %s1275_s28, 2048  ;;  %p1045_p12 = scmp.lt.s32.totalorder %s1275_s28, %s1275_s28 }
  0x35   : > { %p1038_p5 = scmp.ne.s32.totalorder %s1275_s28, %s1037_s25  ;;  %p1046_p0 = scmp.lt.s32.totalorder %s1037_s25, %s1037_s25 }
  0x37   : > { %p1040_p7 = pnand %p1038_p5, %p998_p13  ;;  %p1047_p1 = por %p1046_p0, %p1045_p12 }
  0x39   : > { %p1041_p9 = pneg %p1040_p7 }
  0x3b   : > { %p1048_p2 = pnand %p1047_p1, %p1041_p9 }
  0x3d   : > { %1051 = shalt.err (!%p1048_p2)
}
  0x3e   : > { %924 = dma.hbm_to_vmem [thread:$0]  (!%p1271_p11), %s1517_s2, 2048, %s1275_s28, [#allocation6], %s1188_s11, %s1188_s11, %s1189_s12  }
  0x3f   : > { %s1336_s26 = sadd.s32 1, %s1184_s18   ;;  %s32_s9 = sadd.s32 1, %s1180_s17 }
  0x40   : > { %s29_s10 = ssub.s32 %s1184_s18, %s1336_s26  ;;  %p39_p13 = scmp.ne.s32.totalorder %s1180_s17, %s1176_s16 }
  0x41   : > { %p30_p6 = scmp.eq.s32.totalorder %s29_s10, 0  ;;  %p40_p10 = scmp.eq.s32.totalorder %s1184_s18, 0 }
  0x42   : > { %p1527_p3 = scmp.eq.s32.totalorder %s1241_s19, 1  ;;  %p938_p7 = scmp.lt.s32.totalorder %s1184_s18, 2 }
  0x43   : > { %s1352_s14 = scalar_select %p30_p6, %s1180_s17, %s32_s9  }
  0x44   : > { %p1346_p5 = por %p1527_p3, %p39_p13  ;;  %p41_p9 = por %p40_p10, %p39_p13 }
  0x45   : > { %s189_s20 = sand.u32 1, %s1180_s17   ;;  %s721_s28 = sshll.u32 %s1184_s18, 9 }
  0x46   : > { %s1528_s13 = scalar_select %p1346_p5, 1, 0 }
  0x47   : > { %s704_s24 = sshll.u32 %s189_s20, 5  ;;  %s1359_s30 = scalar_lea.hbm %s1515_s0, %s721_s28 }
  0x48   : > { %s193_s5 = scalar_lea.vmem [#allocation2], %s704_s24  ;;  %p1363_p11 = pnand %p938_p7, %p41_p9 }
  0x49   : > { %s200_s6 = sshll.u32 %s193_s5, 4  ;;  %s1367_s7 = scalar_lea.sflag [#allocation3], %s189_s20  ;;  %s1361_s6 = int_to_ptr.vmem [resolvable:$true] %s200_s6 }
  0x4a   : > { %s1052_s8 = scalar_lea.hbm %s1359_s30, 512  ;;  %p1054_p0 = pneg %p1363_p11 }
  0x4b   : > { %p1053_p12 = scmp.ne.s32.totalorder %s1359_s30, %s1052_s8  ;;  %s1057_s24 = scalar_lea.hbm %s1515_s0, 1024 }
  0x4c   : > { %p1058_p13 = scmp.lt.u32.totalorder %s1359_s30, %s1515_s0  ;;  %p1059_p6 = scmp.lt.u32.totalorder %s1057_s24, %s1052_s8 }
  0x4d   : > { %p1055_p1 = pnand %p1054_p0, %p1053_p12  ;;  %p1061_p3 = scmp.lt.u32.totalorder %s1052_s8, %s1359_s30 }
  0x4e   : > { %p1060_p10 = por %p1059_p6, %p1058_p13 }
  0x4f   : > { %p1056_p2 = pneg %p1055_p1 }
  0x50   : > { %p1062_p7 = por %p1061_p3, %p1060_p10 }
  0x52   : > { %p1063_p9 = pnand %p1062_p7, %p1056_p2 }
  0x54   : > { %1066 = shalt.err (!%p1063_p9)
}
  0x55   : > { %s1067_s20 = scalar_lea.vmem %s1361_s6, 512  ;;  %s1190_s29 = smov [#allocation2]  }
  0x56   : > { %p1068_p12 = scmp.ne.s32.totalorder %s1361_s6, %s1067_s20  ;;  %s1072_s5 = sshll.u32 %s1190_s29, 4  ;;  %s1073_s5 = int_to_ptr.vmem [resolvable:$false] %s1072_s5 }
  0x57   : > { %s1074_s9 = scalar_lea.vmem %s1073_s5, 1024  ;;  %p1075_p4 = scmp.lt.s32.totalorder %s1361_s6, %s1073_s5 }
  0x58   : > { %p1070_p1 = pnand %p1068_p12, %p1054_p0  ;;  %p1076_p13 = scmp.lt.s32.totalorder %s1074_s9, %s1067_s20 }
  0x5a   : > { %p1071_p5 = pneg %p1070_p1  ;;  %p1077_p6 = por %p1076_p13, %p1075_p4 }
  0x5c   : > { %p1078_p10 = pnand %p1077_p6, %p1071_p5 }
  0x5e   : > { %1081 = shalt.err (!%p1078_p10)
}
  0x5f   : > { %928 = dma.hbm_to_vmem [thread:$0]  (!%p1363_p11), %s1359_s30, 512, %s1361_s6, %s1367_s7, %s1188_s11, %s1188_s11, %s1189_s12  }
  0x60   : > { %212 = sbr.rel (%p1260_p8) target bundleno = 1051 (0x41b), region = 32  ;;  %s1401_s8 = sand.u32 (!%p1260_p8), 1, %s1176_s16  }
  0x61   : > { %s1404_s10 = sshll.u32 (!%p1260_p8), %s1401_s8, 5  ;;  %s215_s25 = scalar_lea.sflag (!%p1260_p8), [#allocation3], %s1401_s8 }
  0x62   : > { %s1408_s24 = scalar_lea.vmem (!%p1260_p8), [#allocation2], %s1404_s10  ;;  %p1530_p4 = scmp.ne.s32.totalorder (!%p1260_p8), %s1523_s21, 0 }
  0x67   : > { %1155 = dma.done.wait (%p1530_p4), %s215_s25, 512  }
  0x68   : > { %1157 = vsyncadd (%p1530_p4), %s215_s25, 4294966784  ;;  %p1531_p5 = scmp.eq.s32.totalorder %s1241_s19, 0 }
  0x6a   : > { %1159 = dma.done.wait (%p1531_p5), [#allocation6], 4096   ;;  %p1532_p8 = pmov %p1531_p5 }
  0x6b   : > { %v263_v0 = vld [vmem:[#allocation5] sm:$0xff]  ;;  %v264_v1 = vld [vmem:[#allocation5 + $0x8] sm:$0xff]  ;;  %v265_v2 = vld [vmem:[#allocation5 + $0x10] sm:$0xff]  ;;  %v380_v28 = vlaneseq  ;;  %s255_s21 = scalar_lea.vmem [#allocation9], %s1404_s10  ;;  %s722_s11 = sshll.u32 %s1241_s19, 9 }
  0x6c   : > { %1161 = vsyncadd (%p1532_p8), [#allocation6], 4294963200  ;;  %v840_v3 = vpack.c.bf16 %v264_v1, %v263_v0  ;;  %v266_v4 = vld [vmem:[#allocation5 + $0x18] sm:$0xff]  ;;  %v267_v6 = vld [vmem:[#allocation5 + $0x20] sm:$0xff]  ;;  %s575_s23 = sshll.u32 %s255_s21, 4  ;;  %s1431_s6 = scalar_lea.hbm %s1519_s4, %s722_s11  ;;  %s1424_s23 = int_to_ptr.vmem [resolvable:$true] %s575_s23 }
  0x6d   : > { %v844_v5 = vpack.c.bf16 %v266_v4, %v265_v2  ;;  %v268_v7 = vld [vmem:[#allocation5 + $0x28] sm:$0xff]  ;;  %v259_v9 = vld [vmem:[%s1408_s24] sm:$0xff]  ;;  %v269_v10 = vld [vmem:[#allocation5 + $0x30] sm:$0xff]  ;;  %v381_v29 = vand.u32 127, %v380_v28  ;;  %s546_s7 = scalar_lea.sflag [#allocation10], %s1401_s8  ;;  %s1082_s28 = scalar_lea.vmem %s1424_s23, 512 }
  0x6e   : > { %841 = vmatprep.subr.bf16.mxu0 %v840_v3  ;;  %v848_v8 = vpack.c.bf16 %v268_v7, %v267_v6  ;;  %v270_v11 = vld [vmem:[#allocation5 + $0x38] sm:$0xff]  ;;  %796 = vmatprep.mubr.f32.mxu0 %v259_v9  ;;  %v271_v13 = vld [vmem:[#allocation5 + $0x40] sm:$0xff]  ;;  %v272_v14 = vld [vmem:[#allocation5 + $0x48] sm:$0xff]  ;;  %p1083_p11 = scmp.ne.s32.totalorder %s1424_s23, %s1082_s28  ;;  %p1533_p0 = scmp.ne.s32.totalorder %s1528_s13, 0 }
  0x6f   : > { %843 = vmatpush3.bf16.msra.mxu0 %v840_v3  ;;  %v852_v12 = vpack.c.bf16 %v270_v11, %v269_v10  ;;  %v856_v15 = vpack.c.bf16 %v272_v14, %v271_v13  ;;  %v273_v16 = vld [vmem:[#allocation5 + $0x50] sm:$0xff]  ;;  %v274_v17 = vld [vmem:[#allocation5 + $0x58] sm:$0xff]  ;;  %v275_v19 = vld [vmem:[#allocation5 + $0x60] sm:$0xff]  ;;  %vm382_vm0 = vcmp.lt.s32.totalorder %v381_v29, 100  ;;  %s1191_s27 = smov [#allocation9]  }
  0x70   : > { %845 = vmatprep.subr.bf16.mxu0 %v844_v5  ;;  %v860_v18 = vpack.c.bf16 %v274_v17, %v273_v16  ;;  %v276_v20 = vld [vmem:[#allocation5 + $0x68] sm:$0xff]  ;;  %v277_v22 = vld [vmem:[#allocation5 + $0x70] sm:$0xff]  ;;  %v278_v23 = vld [vmem:[#allocation5 + $0x78] sm:$0xff]  ;;  %p1084_p2 = pnand %p1083_p11, %p1533_p0  ;;  %s1086_s20 = sshll.u32 %s1191_s27, 4  ;;  %s1087_s20 = int_to_ptr.vmem [resolvable:$false] %s1086_s20 }
  0x71   : > { %v864_v21 = vpack.c.bf16 %v276_v20, %v275_v19  ;;  %v868_v24 = vpack.c.bf16 %v278_v23, %v277_v22  ;;  %v260_v25 = vld [vmem:[%s1408_s24 + $0x8] sm:$0xff]  ;;  %v261_v26 = vld [vmem:[%s1408_s24 + $0x10] sm:$0xff]  ;;  %v262_v27 = vld [vmem:[%s1408_s24 + $0x18] sm:$0xff]  ;;  %s1088_s29 = scalar_lea.vmem %s1087_s20, 1024  ;;  %p1089_p7 = scmp.lt.s32.totalorder %s1424_s23, %s1087_s20 }
  0x72   : > { %v279_v54 = vld [vmem:[#allocation7] sm:$0xff]  ;;  %v280_v55 = vld [vmem:[#allocation7 + $0x8] sm:$0xff]  ;;  %v281_v56 = vld [vmem:[#allocation7 + $0x10] sm:$0xff]  ;;  %p1085_p3 = pneg %p1084_p2  ;;  %p1090_p9 = scmp.lt.s32.totalorder %s1088_s29, %s1082_s28 }
  0x73   : > { %847 = vmatpush3.bf16.msra.mxu0 %v844_v5  ;;  %v872_v57 = vpack.c.bf16 %v280_v55, %v279_v54  ;;  %v282_v58 = vld [vmem:[#allocation7 + $0x18] sm:$0xff]  ;;  %v283_v60 = vld [vmem:[#allocation7 + $0x20] sm:$0xff]  ;;  %v284_v61 = vld [vmem:[#allocation7 + $0x28] sm:$0xff] }
  0x74   : > { %849 = vmatprep.subr.bf16.mxu0 %v848_v8  ;;  %v876_v59 = vpack.c.bf16 %v282_v58, %v281_v56  ;;  %v880_v62 = vpack.c.bf16 %v284_v61, %v283_v60  ;;  %v285_v63 = vld [vmem:[#allocation7 + $0x30] sm:$0xff]  ;;  %v286_v0 = vld [vmem:[#allocation7 + $0x38] sm:$0xff]  ;;  %v287_v14 = vld [vmem:[#allocation7 + $0x40] sm:$0xff]  ;;  %p1091_p12 = por %p1090_p9, %p1089_p7 }
  0x75   : > { %873 = vmatprep.subr.bf16.mxu1 %v872_v57  ;;  %v884_v1 = vpack.c.bf16 %v286_v0, %v285_v63  ;;  %v289_v17 = vld [vmem:[#allocation7 + $0x50] sm:$0xff]  ;;  %v291_v20 = vld [vmem:[#allocation7 + $0x60] sm:$0xff] }
  0x76   : > { %875 = vmatpush3.bf16.msra.mxu1 %v872_v57  ;;  %v293_v23 = vld [vmem:[#allocation7 + $0x70] sm:$0xff]  ;;  %p1092_p1 = pnand %p1091_p12, %p1085_p3 }
  0x77   : > { %851 = vmatpush3.bf16.msra.mxu0 %v848_v8  ;;  %877 = vmatprep.subr.bf16.mxu1 %v876_v59 }
  0x78   : > { %853 = vmatprep.subr.bf16.mxu0 %v852_v12 }
  0x7a   : > { %879 = vmatpush3.bf16.msra.mxu1 %v876_v59 }
  0x7b   : > { %855 = vmatpush3.bf16.msra.mxu0 %v852_v12  ;;  %881 = vmatprep.subr.bf16.mxu1 %v880_v62 }
  0x7c   : > { %857 = vmatprep.subr.bf16.mxu0 %v856_v15 }
  0x7e   : > { %883 = vmatpush3.bf16.msra.mxu1 %v880_v62 }
  0x7f   : > { %859 = vmatpush3.bf16.msra.mxu0 %v856_v15  ;;  %885 = vmatprep.subr.bf16.mxu1 %v884_v1  ;;  %v288_v15 = vld [vmem:[#allocation7 + $0x48] sm:$0xff] }
  0x80   : > { %861 = vmatprep.subr.bf16.mxu0 %v860_v18  ;;  %v888_v16 = vpack.c.bf16 %v288_v15, %v287_v14 }
  0x82   : > { %887 = vmatpush3.bf16.msra.mxu1 %v884_v1 }
  0x83   : > { %863 = vmatpush3.bf16.msra.mxu0 %v860_v18  ;;  %889 = vmatprep.subr.bf16.mxu1 %v888_v16  ;;  %v290_v18 = vld [vmem:[#allocation7 + $0x58] sm:$0xff] }
  0x84   : > { %865 = vmatprep.subr.bf16.mxu0 %v864_v21  ;;  %v892_v19 = vpack.c.bf16 %v290_v18, %v289_v17 }
  0x86   : > { %891 = vmatpush3.bf16.msra.mxu1 %v888_v16 }
  0x87   : > { %867 = vmatpush3.bf16.msra.mxu0 %v864_v21  ;;  %893 = vmatprep.subr.bf16.mxu1 %v892_v19  ;;  %v292_v21 = vld [vmem:[#allocation7 + $0x68] sm:$0xff] }
  0x88   : > { %869 = vmatprep.subr.bf16.mxu0 %v868_v24  ;;  %v896_v22 = vpack.c.bf16 %v292_v21, %v291_v20 }
  0x8a   : > { %895 = vmatpush3.bf16.msra.mxu1 %v892_v19 }
  0x8b   : > { %871 = vmatpush3.bf16.msra.mxu0 %v868_v24  ;;  %v294_v24 = vld [vmem:[#allocation7 + $0x78] sm:$0xff]  ;;  %897 = vmatprep.subr.bf16.mxu1 %v896_v22 }
  0x8e   : > { %797 = vmatmul.mubr.f32.vlgmr.msra.gmra.mrb[0].mxu0 %v260_v25  ;;  %v900_v25 = vpack.c.bf16 %v294_v24, %v293_v23  ;;  %899 = vmatpush3.bf16.msra.mxu1 %v896_v22 }
  0x8f   : > { %799 = vmatprep.mubr.f32.mxu0 %v261_v26 }
  0x90   : > { %901 = vmatprep.subr.bf16.mxu1 %v900_v25 }
  0x92   : > { %800 = vmatmul.mubr.f32.gmra.mrb[2].mxu0 %v262_v27  ;;  %903 = vmatpush3.bf16.msra.mxu1 %v900_v25 }
 0x161   : > { %v798_v30 = vpop.f32.mrb[0].mxu0 }
 0x162   : > { %v361_v31 = vpop.f32.mrb[1].mxu0  ;;  %v384_v35 = vsel %vm382_vm0, %v798_v30, -inf }
 0x163   : > { %v383_v32 = vsel %vm382_vm0, %v361_v31, -inf }
 0x164   : > { %387 = vmax.xlane.f32.xlu0 %v383_v32 }
 0x165   : > { %v801_v33 = vpop.f32.mrb[2].mxu0 }
 0x166   : > { %v371_v34 = vpop.f32.mrb[3].mxu0  ;;  %v386_v37 = vsel %vm382_vm0, %v801_v33, -inf }
 0x167   : > { %v385_v36 = vsel %vm382_vm0, %v371_v34, -inf }
 0x168   : > { %389 = vmax.xlane.f32.xlu0 %v384_v35  ;;  %391 = vmax.xlane.f32.xlu1 %v385_v36 }
 0x16c   : > { %393 = vmax.xlane.f32.xlu1 %v386_v37 }
 0x1f1   : > { %v388_v38 = vpop.xlane.xlu0 %387 }
 0x1f2   : > { %v395_v39 = vsub.f32 %v383_v32, %v388_v38 }
 0x1f4   : > { %v399_v40 = vmul.f32 1.442695, %v395_v39 }
 0x1f5   : > { %v390_v41 = vpop.xlane.xlu0 %389  ;;  %v392_v42 = vpop.xlane.xlu1 %391 }
 0x1f6   : > { %980 = vpow2.f32 %v399_v40  ;;  %v396_v43 = vsub.f32 %v384_v35, %v390_v41  ;;  %v397_v44 = vsub.f32 %v385_v36, %v392_v42 }
 0x1f8   : > { %v401_v45 = vmul.f32 1.442695, %v396_v43  ;;  %v403_v46 = vmul.f32 1.442695, %v397_v44 }
 0x1f9   : > { %v394_v47 = vpop.xlane.xlu1 %393 }
 0x1fa   : > { %982 = vpow2.f32 %v401_v45  ;;  %v398_v48 = vsub.f32 %v386_v37, %v394_v47 }
 0x1fb   : > { %984 = vpow2.f32 %v403_v46 }
 0x1fc   : > { %v405_v49 = vmul.f32 1.442695, %v398_v48 }
 0x1fe   : > { %986 = vpow2.f32 %v405_v49 }
 0x200   : > { %v981_v50 = vpop.eup %980 }
 0x201   : > { %407 = vadd.xlane.f32.xlu0 %v981_v50 }
 0x204   : > { %v983_v51 = vpop.eup %982 }
 0x205   : > { %v985_v52 = vpop.eup %984  ;;  %409 = vadd.xlane.f32.xlu1 %v983_v51 }
 0x206   : > { %411 = vadd.xlane.f32.xlu0 %v985_v52 }
 0x208   : > { %v987_v53 = vpop.eup %986 }
 0x209   : > { %413 = vadd.xlane.f32.xlu1 %v987_v53 }
 0x28e   : > { %v408_v2 = vpop.xlane.xlu0 %407 }
 0x28f   : > { %v415_v3 = vmul.f32 0.0025, %v408_v2 }
 0x291   : > { %vm419_vm1 = vcmp.gt.f32.partialorder %v981_v50, %v415_v3 }
 0x292   : > { %v410_v4 = vpop.xlane.xlu1 %409  ;;  %v423_v5 = vsel %vm419_vm1, %v981_v50, 0.0 }
 0x293   : > { %v412_v6 = vpop.xlane.xlu0 %411  ;;  %v416_v7 = vmul.f32 0.0025, %v410_v4  ;;  %427 = vadd.xlane.f32.xlu0 %v423_v5 }
 0x294   : > { %v417_v8 = vmul.f32 0.0025, %v412_v6 }
 0x295   : > { %vm420_vm2 = vcmp.gt.f32.partialorder %v983_v51, %v416_v7 }
 0x296   : > { %v414_v9 = vpop.xlane.xlu1 %413  ;;  %vm421_vm3 = vcmp.gt.f32.partialorder %v985_v52, %v417_v8  ;;  %v424_v10 = vsel %vm420_vm2, %v983_v51, 0.0 }
 0x297   : > { %v418_v11 = vmul.f32 0.0025, %v414_v9  ;;  %v425_v12 = vsel %vm421_vm3, %v985_v52, 0.0  ;;  %429 = vadd.xlane.f32.xlu1 %v424_v10 }
 0x298   : > { %431 = vadd.xlane.f32.xlu0 %v425_v12 }
 0x299   : > { %vm422_vm4 = vcmp.gt.f32.partialorder %v987_v53, %v418_v11 }
 0x29a   : > { %v426_v13 = vsel %vm422_vm4, %v987_v53, 0.0 }
 0x29b   : > { %433 = vadd.xlane.f32.xlu1 %v426_v13 }
 0x320   : > { %v428_v26 = vpop.xlane.xlu0 %427 }
 0x321   : > { %v435_v27 = vmax.f32 %v428_v26, 1e-12 }
 0x323   : > { %988 = vrcp.f32 %v435_v27 }
 0x324   : > { %v430_v28 = vpop.xlane.xlu1 %429 }
 0x325   : > { %v432_v29 = vpop.xlane.xlu0 %431  ;;  %v436_v30 = vmax.f32 %v430_v28, 1e-12 }
 0x326   : > { %v437_v31 = vmax.f32 %v432_v29, 1e-12 }
 0x327   : > { %990 = vrcp.f32 %v436_v30 }
 0x328   : > { %992 = vrcp.f32 %v437_v31  ;;  %v434_v32 = vpop.xlane.xlu1 %433 }
 0x329   : > { %v438_v33 = vmax.f32 %v434_v32, 1e-12 }
 0x32b   : > { %994 = vrcp.f32 %v438_v33 }
 0x32d   : > { %v989_v34 = vpop.eup %988 }
 0x32e   : > { %v443_v35 = vmul.f32 %v989_v34, %v423_v5 }
 0x330   : > { %447 = vst [vmem:[%s255_s21] sm:$0xff] %v443_v35  ;;  %834 = vmatprep.mubr.f32.mxu1 %v443_v35 }
 0x331   : > { %v991_v36 = vpop.eup %990 }
 0x332   : > { %v993_v37 = vpop.eup %992  ;;  %v444_v38 = vmul.f32 %v991_v36, %v424_v10 }
 0x333   : > { %v445_v39 = vmul.f32 %v993_v37, %v425_v12 }
 0x334   : > { %448 = vst [vmem:[%s255_s21 + $0x8] sm:$0xff] %v444_v38  ;;  %835 = vmatmul.mubr.f32.vlgmr.msra.gmra.mrb[0].mxu1 %v444_v38 }
 0x335   : > { %v995_v40 = vpop.eup %994  ;;  %449 = vst [vmem:[%s255_s21 + $0x10] sm:$0xff] %v445_v39  ;;  %837 = vmatprep.mubr.f32.mxu1 %v445_v39 }
 0x336   : > { %v446_v41 = vmul.f32 %v995_v40, %v426_v13 }
 0x338   : > { %450 = vst [vmem:[%s255_s21 + $0x18] sm:$0xff] %v446_v41  ;;  %838 = vmatmul.mubr.f32.gmra.mrb[2].mxu1 %v446_v41 }
 0x339   : > { %1095 = shalt.err (!%p1092_p1)
}
 0x33a   : > { %s1096_s5 = scalar_lea.hbm %s1431_s6, 512  ;;  %s1100_s24 = scalar_lea.hbm %s1519_s4, 1024 }
 0x33b   : > { %p1097_p13 = scmp.ne.s32.totalorder %s1431_s6, %s1096_s5  ;;  %p1101_p4 = scmp.lt.u32.totalorder %s1431_s6, %s1519_s4 }
 0x33c   : > { %p1102_p5 = scmp.lt.u32.totalorder %s1100_s24, %s1096_s5  ;;  %p1104_p11 = scmp.lt.u32.totalorder %s1096_s5, %s1431_s6 }
 0x33d   : > { %p1098_p6 = pnand %p1097_p13, %p1533_p0 }
 0x33e   : > { %p1103_p8 = por %p1102_p5, %p1101_p4 }
 0x33f   : > { %p1099_p10 = pneg %p1098_p6 }
 0x340   : > { %p1105_p2 = por %p1104_p11, %p1103_p8 }
 0x342   : > { %p1106_p3 = pnand %p1105_p2, %p1099_p10 }
 0x344   : > { %1109 = shalt.err (!%p1106_p3)
}
 0x345   : > { %s1192_s30 = smov 128   ;;  %s1193_s28 = smov 8  }
 0x346   : > { %915 = dma.vmem_to_hbm [thread:$0]  (%p1533_p0), %s1424_s23, 512, %s1431_s6, %s546_s7, %s1192_s30, %s1192_s30, %s1193_s28  }
 0x347   : > { %s248_s27 = scalar_lea.vmem [#allocation8], %s1404_s10  ;;  %s1468_s9 = scalar_lea.hbm %s1518_s3, %s722_s11 }
 0x348   : > { %s559_s20 = sshll.u32 %s248_s27, 4  ;;  %s541_s10 = scalar_lea.sflag [#allocation4], %s1401_s8  ;;  %s1461_s20 = int_to_ptr.vmem [resolvable:$true] %s559_s20 }
 0x349   : > { %s1110_s23 = scalar_lea.vmem %s1461_s20, 512  ;;  %s1194_s6 = smov [#allocation8]  }
 0x34a   : > { %p1111_p7 = scmp.ne.s32.totalorder %s1461_s20, %s1110_s23  ;;  %s1114_s7 = sshll.u32 %s1194_s6, 4  ;;  %s1115_s7 = int_to_ptr.vmem [resolvable:$false] %s1114_s7 }
 0x34b   : > { %s1116_s25 = scalar_lea.vmem %s1115_s7, 1024  ;;  %p1117_p1 = scmp.lt.s32.totalorder %s1461_s20, %s1115_s7 }
 0x34c   : > { %p1112_p9 = pnand %p1111_p7, %p1533_p0  ;;  %p1118_p13 = scmp.lt.s32.totalorder %s1116_s25, %s1110_s23 }
 0x34e   : > { %p1113_p12 = pneg %p1112_p9  ;;  %p1119_p6 = por %p1118_p13, %p1117_p1 }
 0x350   : > { %p1120_p10 = pnand %p1119_p6, %p1113_p12 }
 0x407   : > { %v836_v42 = vpop.f32.mrb[0].mxu1 }
 0x408   : > { %537 = vst [vmem:[%s248_s27 + $0x8] sm:$0xff] %v836_v42  ;;  %v517_v43 = vpop.f32.mrb[1].mxu1 }
 0x409   : > { %536 = vst [vmem:[%s248_s27] sm:$0xff] %v517_v43 }
 0x40b   : > { %v839_v44 = vpop.f32.mrb[2].mxu1 }
 0x40c   : > { %539 = vst [vmem:[%s248_s27 + $0x18] sm:$0xff] %v839_v44  ;;  %v527_v45 = vpop.f32.mrb[3].mxu1 }
 0x40d   : > { %538 = vst [vmem:[%s248_s27 + $0x10] sm:$0xff] %v527_v45 }
 0x40e   : > { %1123 = shalt.err (!%p1120_p10)
}
 0x40f   : > { %s1124_s19 = scalar_lea.hbm %s1468_s9, 512  ;;  %s1128_s21 = scalar_lea.hbm %s1518_s3, 1024 }
 0x410   : > { %p1125_p4 = scmp.ne.s32.totalorder %s1468_s9, %s1124_s19  ;;  %p1129_p11 = scmp.lt.u32.totalorder %s1468_s9, %s1518_s3 }
 0x411   : > { %p1130_p2 = scmp.lt.u32.totalorder %s1128_s21, %s1124_s19  ;;  %p1132_p7 = scmp.lt.u32.totalorder %s1124_s19, %s1468_s9 }
 0x412   : > { %p1126_p5 = pnand %p1125_p4, %p1533_p0 }
 0x413   : > { %p1131_p3 = por %p1130_p2, %p1129_p11 }
 0x414   : > { %p1127_p8 = pneg %p1126_p5 }
 0x415   : > { %p1133_p9 = por %p1132_p7, %p1131_p3 }
 0x417   : > { %p1134_p12 = pnand %p1133_p9, %p1127_p8 }
 0x419   : > { %1137 = shalt.err (!%p1134_p12)
}
 0x41a   : > { %914 = dma.vmem_to_hbm [thread:$0]  (%p1533_p0), %s1461_s20, 512, %s1468_s9, %s541_s10, %s1192_s30, %s1192_s30, %s1193_s28  }
 0x41b PF: > { %s590_s29 = sand.u32 1, %s1172_s15   ;;  %p1534_p1 = scmp.ne.s32.totalorder %s1524_s22, 0 }
 0x41c   : > { %p1535_p13 = scmp.ge.s32.totalorder %s1184_s18, 2  ;;  %s591_s5 = scalar_lea.sflag [#allocation4], %s590_s29 }
 0x41e   : > { %p930_p6 = pnand %p1535_p13, %p1534_p1 }
 0x420   : > { %1163 = dma.done.wait (!%p930_p6), %s591_s5, 512  }
 0x421   : > { %1165 = vsyncadd (!%p930_p6), %s591_s5, 4294966784  ;;  %s600_s13 = scalar_lea.sflag [#allocation10], %s590_s29 }
 0x422   : > { %1167 = dma.done.wait (!%p930_p6), %s600_s13, 512  }
 0x423   : > { %1169 = vsyncadd (!%p930_p6), %s600_s13, 4294966784  ;;  %p22_p0 = scmp.ge.s32.totalorder %s1336_s26, 4   ;;  %s1536_s15 = smov %s1176_s16 }
 0x424   : > { %s1537_s16 = smov %s1180_s17  ;;  %s1538_s17 = smov %s1352_s14 }
 0x425   : > { %s1539_s18 = smov %s1336_s26  ;;  %24 = sbr.rel (!%p22_p0) target bundleno = 8 (0x8), region = 102 }
 0x42c   :  { %605 = vsyncpa [#allocation3], 1 }
 0x42d   :  { %607 = vsyncpa [#allocation3 + $0x1], 1 }
 0x42e   :  { %608 = vsyncpa [#allocation6], 1 }
 0x42f   :  { %609 = vsyncpa [#allocation4], 1 }
 0x430   :  { %611 = vsyncpa [#allocation4 + $0x1], 1 }
 0x431   :  { %612 = vsyncpa [#allocation10], 1 }
 0x432   :  { %614 = vsyncpa [#allocation10 + $0x1], 1 }

// kernel: tpu_custom_call.1
= control target key start
LH: loop header
LB: loop body
LE: loop exit
PB: predicated region body
PF: predicated region fallthrough
CT: control target
= control target key end

     0   :  { %10 = vsyncpa [#allocation3], 0  ;;  %s1515_s0 = inlined_call_operand.hbm [shape: f32[64,128], index: 0, kind: input, shape index: {}]   ;;  %s1516_s1 = inlined_call_operand.hbm [shape: f32[128,128], index: 1, kind: input, shape index: {}]   ;;  %s1517_s2 = inlined_call_operand.hbm [shape: f32[128,128], index: 2, kind: input, shape index: {}]   ;;  %s1518_s3 = inlined_call_operand.hbm [shape: f32[64,128], index: 3, kind: output, shape index: {0}]   ;;  %s1519_s4 = inlined_call_operand.hbm [shape: f32[64,128], index: 4, kind: output, shape index: {1}]  }
   0x1   :  { %12 = vsyncpa [#allocation3 + $0x1], 0 }
   0x2   :  { %13 = vsyncpa [#allocation6], 0 }
   0x3   :  { %14 = vsyncpa [#allocation4], 0 }
   0x4   :  { %16 = vsyncpa [#allocation4 + $0x1], 0 }
   0x5   :  { %17 = vsyncpa [#allocation10], 0 }
   0x6   :  { %19 = vsyncpa [#allocation10 + $0x1], 0  ;;  %s1220_s15 = smov 0   ;;  %s1222_s16 = smov 0  }
   0x7   :  { %s1224_s17 = smov 0   ;;  %s1226_s18 = smov 0  }
   0x8 LB: > { %s1241_s19 = sadd.s32 4294967295, %s1184_s18   ;;  %s699_s20 = sadd.s32 4294967294, %s1184_s18   ;;  %s1184_s18 = sphi %s1226_s18, %s1539_s18   ;;  %s1180_s17 = sphi %s1224_s17, %s1538_s17   ;;  %s1176_s16 = sphi %s1222_s16, %s1537_s16   ;;  %s1172_s15 = sphi %s1220_s15, %s1536_s15  }
   0x9   : > { %p45_p0 = scmp.ne.s32.totalorder %s1176_s16, %s1172_s15  ;;  %p1520_p1 = scmp.eq.s32.totalorder %s1241_s19, 0 }
   0xa   : > { %p117_p3 = scmp.eq.s32.totalorder %s699_s20, 1  ;;  %p700_p5 = scmp.ge.s32.totalorder %s1184_s18, 1 }
   0xb   : > { %p1250_p4 = por %p1520_p1, %p45_p0  ;;  %p150_p7 = scmp.lt.s32.totalorder %s1184_s18, 3 }
   0xc   : > { %p1255_p6 = por %p117_p3, %p45_p0  ;;  %s1186_s24 = smov [#allocation5]  }
   0xd   : > { %s1523_s21 = scalar_select %p1250_p4, 1, 0 }
   0xe   : > { %s1524_s22 = scalar_select %p1255_p6, 1, 0 }
   0xf   : > { %p1260_p8 = pnand %p700_p5, %p150_p7  ;;  %s162_s25 = sshll.u32 %s1186_s24, 4  ;;  %s1264_s25 = int_to_ptr.vmem [resolvable:$true] %s162_s25 }
  0x10   : > { %s1187_s27 = smov [#allocation7]   ;;  %s996_s5 = scalar_lea.hbm %s1516_s1, 2048 }
  0x11   : > { %p918_p9 = pneg %p1260_p8  ;;  %s175_s28 = sshll.u32 %s1187_s27, 4  ;;  %s1275_s28 = int_to_ptr.vmem [resolvable:$true] %s175_s28 }
  0x12   : > { %p997_p12 = scmp.ne.s32.totalorder %s1516_s1, %s996_s5  ;;  %p1003_p5 = scmp.lt.u32.totalorder %s996_s5, %s1516_s1 }
  0x13   : > { %p1271_p11 = pnand %p918_p9, %p1520_p1 }
  0x15   : > { %p998_p13 = pneg %p1271_p11 }
  0x17   : > { %p999_p0 = pnand %p998_p13, %p997_p12 }
  0x19   : > { %p1000_p3 = pneg %p999_p0 }
  0x1b   : > { %p1005_p7 = pnand %p1003_p5, %p1000_p3 }
  0x1d   : > { %1008 = shalt.err (!%p1005_p7)
}
  0x1e   : > { %s1009_s10 = scalar_lea.vmem %s1264_s25, 2048  ;;  %p1017_p2 = scmp.lt.s32.totalorder %s1264_s25, %s1264_s25 }
  0x1f   : > { %p1010_p9 = scmp.ne.s32.totalorder %s1264_s25, %s1009_s10  ;;  %p1018_p12 = scmp.lt.s32.totalorder %s1009_s10, %s1009_s10 }
  0x21   : > { %p1012_p10 = pnand %p1010_p9, %p998_p13  ;;  %p1019_p0 = por %p1018_p12, %p1017_p2 }
  0x23   : > { %p1013_p1 = pneg %p1012_p10 }
  0x25   : > { %p1020_p6 = pnand %p1019_p0, %p1013_p1 }
  0x27   : > { %1023 = shalt.err (!%p1020_p6)
}
  0x28   : > { %s1188_s11 = smov 128   ;;  %s1189_s12 = smov 8  }
  0x29   : > { %921 = dma.hbm_to_vmem [thread:$0]  (!%p1271_p11), %s1516_s1, 2048, %s1264_s25, [#allocation6], %s1188_s11, %s1188_s11, %s1189_s12  }
  0x2a   : > { %s1024_s27 = scalar_lea.hbm %s1517_s2, 2048 }
  0x2b   : > { %p1025_p1 = scmp.ne.s32.totalorder %s1517_s2, %s1024_s27  ;;  %p1031_p10 = scmp.lt.u32.totalorder %s1024_s27, %s1517_s2 }
  0x2d   : > { %p1027_p2 = pnand %p1025_p1, %p998_p13 }
  0x2f   : > { %p1028_p6 = pneg %p1027_p2 }
  0x31   : > { %p1033_p3 = pnand %p1031_p10, %p1028_p6 }
  0x33   : > { %1036 = shalt.err (!%p1033_p3)
}
  0x34   : > { %s1037_s25 = scalar_lea.vmem %s1275_s28, 2048  ;;  %p1045_p12 = scmp.lt.s32.totalorder %s1275_s28, %s1275_s28 }
  0x35   : > { %p1038_p5 = scmp.ne.s32.totalorder %s1275_s28, %s1037_s25  ;;  %p1046_p0 = scmp.lt.s32.totalorder %s1037_s25, %s1037_s25 }
  0x37   : > { %p1040_p7 = pnand %p1038_p5, %p998_p13  ;;  %p1047_p1 = por %p1046_p0, %p1045_p12 }
  0x39   : > { %p1041_p9 = pneg %p1040_p7 }
  0x3b   : > { %p1048_p2 = pnand %p1047_p1, %p1041_p9 }
  0x3d   : > { %1051 = shalt.err (!%p1048_p2)
}
  0x3e   : > { %924 = dma.hbm_to_vmem [thread:$0]  (!%p1271_p11), %s1517_s2, 2048, %s1275_s28, [#allocation6], %s1188_s11, %s1188_s11, %s1189_s12  }
  0x3f   : > { %s1336_s26 = sadd.s32 1, %s1184_s18   ;;  %s32_s9 = sadd.s32 1, %s1180_s17 }
  0x40   : > { %s29_s10 = ssub.s32 %s1184_s18, %s1336_s26  ;;  %p39_p13 = scmp.ne.s32.totalorder %s1180_s17, %s1176_s16 }
  0x41   : > { %p30_p6 = scmp.eq.s32.totalorder %s29_s10, 0  ;;  %p40_p10 = scmp.eq.s32.totalorder %s1184_s18, 0 }
  0x42   : > { %p1527_p3 = scmp.eq.s32.totalorder %s1241_s19, 1  ;;  %p938_p7 = scmp.lt.s32.totalorder %s1184_s18, 2 }
  0x43   : > { %s1352_s14 = scalar_select %p30_p6, %s1180_s17, %s32_s9  }
  0x44   : > { %p1346_p5 = por %p1527_p3, %p39_p13  ;;  %p41_p9 = por %p40_p10, %p39_p13 }
  0x45   : > { %s189_s20 = sand.u32 1, %s1180_s17   ;;  %s721_s28 = sshll.u32 %s1184_s18, 9 }
  0x46   : > { %s1528_s13 = scalar_select %p1346_p5, 1, 0 }
  0x47   : > { %s704_s24 = sshll.u32 %s189_s20, 5  ;;  %s1359_s30 = scalar_lea.hbm %s1515_s0, %s721_s28 }
  0x48   : > { %s193_s5 = scalar_lea.vmem [#allocation2], %s704_s24  ;;  %p1363_p11 = pnand %p938_p7, %p41_p9 }
  0x49   : > { %s200_s6 = sshll.u32 %s193_s5, 4  ;;  %s1367_s7 = scalar_lea.sflag [#allocation3], %s189_s20  ;;  %s1361_s6 = int_to_ptr.vmem [resolvable:$true] %s200_s6 }
  0x4a   : > { %s1052_s8 = scalar_lea.hbm %s1359_s30, 512  ;;  %p1054_p0 = pneg %p1363_p11 }
  0x4b   : > { %p1053_p12 = scmp.ne.s32.totalorder %s1359_s30, %s1052_s8  ;;  %s1057_s24 = scalar_lea.hbm %s1515_s0, 1024 }
  0x4c   : > { %p1058_p13 = scmp.lt.u32.totalorder %s1359_s30, %s1515_s0  ;;  %p1059_p6 = scmp.lt.u32.totalorder %s1057_s24, %s1052_s8 }
  0x4d   : > { %p1055_p1 = pnand %p1054_p0, %p1053_p12  ;;  %p1061_p3 = scmp.lt.u32.totalorder %s1052_s8, %s1359_s30 }
  0x4e   : > { %p1060_p10 = por %p1059_p6, %p1058_p13 }
  0x4f   : > { %p1056_p2 = pneg %p1055_p1 }
  0x50   : > { %p1062_p7 = por %p1061_p3, %p1060_p10 }
  0x52   : > { %p1063_p9 = pnand %p1062_p7, %p1056_p2 }
  0x54   : > { %1066 = shalt.err (!%p1063_p9)
}
  0x55   : > { %s1067_s20 = scalar_lea.vmem %s1361_s6, 512  ;;  %s1190_s29 = smov [#allocation2]  }
  0x56   : > { %p1068_p12 = scmp.ne.s32.totalorder %s1361_s6, %s1067_s20  ;;  %s1072_s5 = sshll.u32 %s1190_s29, 4  ;;  %s1073_s5 = int_to_ptr.vmem [resolvable:$false] %s1072_s5 }
  0x57   : > { %s1074_s9 = scalar_lea.vmem %s1073_s5, 1024  ;;  %p1075_p4 = scmp.lt.s32.totalorder %s1361_s6, %s1073_s5 }
  0x58   : > { %p1070_p1 = pnand %p1068_p12, %p1054_p0  ;;  %p1076_p13 = scmp.lt.s32.totalorder %s1074_s9, %s1067_s20 }
  0x5a   : > { %p1071_p5 = pneg %p1070_p1  ;;  %p1077_p6 = por %p1076_p13, %p1075_p4 }
  0x5c   : > { %p1078_p10 = pnand %p1077_p6, %p1071_p5 }
  0x5e   : > { %1081 = shalt.err (!%p1078_p10)
}
  0x5f   : > { %928 = dma.hbm_to_vmem [thread:$0]  (!%p1363_p11), %s1359_s30, 512, %s1361_s6, %s1367_s7, %s1188_s11, %s1188_s11, %s1189_s12  }
  0x60   : > { %212 = sbr.rel (%p1260_p8) target bundleno = 1051 (0x41b), region = 32  ;;  %s1401_s8 = sand.u32 (!%p1260_p8), 1, %s1176_s16  }
  0x61   : > { %s1404_s10 = sshll.u32 (!%p1260_p8), %s1401_s8, 5  ;;  %s215_s25 = scalar_lea.sflag (!%p1260_p8), [#allocation3], %s1401_s8 }
  0x62   : > { %s1408_s24 = scalar_lea.vmem (!%p1260_p8), [#allocation2], %s1404_s10  ;;  %p1530_p4 = scmp.ne.s32.totalorder (!%p1260_p8), %s1523_s21, 0 }
  0x67   : > { %1155 = dma.done.wait (%p1530_p4), %s215_s25, 512  }
  0x68   : > { %1157 = vsyncadd (%p1530_p4), %s215_s25, 4294966784  ;;  %p1531_p5 = scmp.eq.s32.totalorder %s1241_s19, 0 }
  0x6a   : > { %1159 = dma.done.wait (%p1531_p5), [#allocation6], 4096   ;;  %p1532_p8 = pmov %p1531_p5 }
  0x6b   : > { %v263_v0 = vld [vmem:[#allocation5] sm:$0xff]  ;;  %v264_v1 = vld [vmem:[#allocation5 + $0x8] sm:$0xff]  ;;  %v265_v2 = vld [vmem:[#allocation5 + $0x10] sm:$0xff]  ;;  %v380_v28 = vlaneseq  ;;  %s255_s21 = scalar_lea.vmem [#allocation9], %s1404_s10  ;;  %s722_s11 = sshll.u32 %s1241_s19, 9 }
  0x6c   : > { %1161 = vsyncadd (%p1532_p8), [#allocation6], 4294963200  ;;  %v840_v3 = vpack.c.bf16 %v264_v1, %v263_v0  ;;  %v266_v4 = vld [vmem:[#allocation5 + $0x18] sm:$0xff]  ;;  %v267_v6 = vld [vmem:[#allocation5 + $0x20] sm:$0xff]  ;;  %s575_s23 = sshll.u32 %s255_s21, 4  ;;  %s1431_s6 = scalar_lea.hbm %s1519_s4, %s722_s11  ;;  %s1424_s23 = int_to_ptr.vmem [resolvable:$true] %s575_s23 }
  0x6d   : > { %v844_v5 = vpack.c.bf16 %v266_v4, %v265_v2  ;;  %v268_v7 = vld [vmem:[#allocation5 + $0x28] sm:$0xff]  ;;  %v259_v9 = vld [vmem:[%s1408_s24] sm:$0xff]  ;;  %v269_v10 = vld [vmem:[#allocation5 + $0x30] sm:$0xff]  ;;  %v381_v29 = vand.u32 127, %v380_v28  ;;  %s546_s7 = scalar_lea.sflag [#allocation10], %s1401_s8  ;;  %s1082_s28 = scalar_lea.vmem %s1424_s23, 512 }
  0x6e   : > { %841 = vmatprep.subr.bf16.mxu0 %v840_v3  ;;  %v848_v8 = vpack.c.bf16 %v268_v7, %v267_v6  ;;  %v270_v11 = vld [vmem:[#allocation5 + $0x38] sm:$0xff]  ;;  %796 = vmatprep.mubr.f32.mxu0 %v259_v9  ;;  %v271_v13 = vld [vmem:[#allocation5 + $0x40] sm:$0xff]  ;;  %v272_v14 = vld [vmem:[#allocation5 + $0x48] sm:$0xff]  ;;  %p1083_p11 = scmp.ne.s32.totalorder %s1424_s23, %s1082_s28  ;;  %p1533_p0 = scmp.ne.s32.totalorder %s1528_s13, 0 }
  0x6f   : > { %843 = vmatpush3.bf16.msra.mxu0 %v840_v3  ;;  %v852_v12 = vpack.c.bf16 %v270_v11, %v269_v10  ;;  %v856_v15 = vpack.c.bf16 %v272_v14, %v271_v13  ;;  %v273_v16 = vld [vmem:[#allocation5 + $0x50] sm:$0xff]  ;;  %v274_v17 = vld [vmem:[#allocation5 + $0x58] sm:$0xff]  ;;  %v275_v19 = vld [vmem:[#allocation5 + $0x60] sm:$0xff]  ;;  %vm382_vm0 = vcmp.lt.s32.totalorder %v381_v29, 100  ;;  %s1191_s27 = smov [#allocation9]  }
  0x70   : > { %845 = vmatprep.subr.bf16.mxu0 %v844_v5  ;;  %v860_v18 = vpack.c.bf16 %v274_v17, %v273_v16  ;;  %v276_v20 = vld [vmem:[#allocation5 + $0x68] sm:$0xff]  ;;  %v277_v22 = vld [vmem:[#allocation5 + $0x70] sm:$0xff]  ;;  %v278_v23 = vld [vmem:[#allocation5 + $0x78] sm:$0xff]  ;;  %p1084_p2 = pnand %p1083_p11, %p1533_p0  ;;  %s1086_s20 = sshll.u32 %s1191_s27, 4  ;;  %s1087_s20 = int_to_ptr.vmem [resolvable:$false] %s1086_s20 }
  0x71   : > { %v864_v21 = vpack.c.bf16 %v276_v20, %v275_v19  ;;  %v868_v24 = vpack.c.bf16 %v278_v23, %v277_v22  ;;  %v260_v25 = vld [vmem:[%s1408_s24 + $0x8] sm:$0xff]  ;;  %v261_v26 = vld [vmem:[%s1408_s24 + $0x10] sm:$0xff]  ;;  %v262_v27 = vld [vmem:[%s1408_s24 + $0x18] sm:$0xff]  ;;  %s1088_s29 = scalar_lea.vmem %s1087_s20, 1024  ;;  %p1089_p7 = scmp.lt.s32.totalorder %s1424_s23, %s1087_s20 }
  0x72   : > { %v279_v54 = vld [vmem:[#allocation7] sm:$0xff]  ;;  %v280_v55 = vld [vmem:[#allocation7 + $0x8] sm:$0xff]  ;;  %v281_v56 = vld [vmem:[#allocation7 + $0x10] sm:$0xff]  ;;  %p1085_p3 = pneg %p1084_p2  ;;  %p1090_p9 = scmp.lt.s32.totalorder %s1088_s29, %s1082_s28 }
  0x73   : > { %847 = vmatpush3.bf16.msra.mxu0 %v844_v5  ;;  %v872_v57 = vpack.c.bf16 %v280_v55, %v279_v54  ;;  %v282_v58 = vld [vmem:[#allocation7 + $0x18] sm:$0xff]  ;;  %v283_v60 = vld [vmem:[#allocation7 + $0x20] sm:$0xff]  ;;  %v284_v61 = vld [vmem:[#allocation7 + $0x28] sm:$0xff] }
  0x74   : > { %849 = vmatprep.subr.bf16.mxu0 %v848_v8  ;;  %v876_v59 = vpack.c.bf16 %v282_v58, %v281_v56  ;;  %v880_v62 = vpack.c.bf16 %v284_v61, %v283_v60  ;;  %v285_v63 = vld [vmem:[#allocation7 + $0x30] sm:$0xff]  ;;  %v286_v0 = vld [vmem:[#allocation7 + $0x38] sm:$0xff]  ;;  %v287_v14 = vld [vmem:[#allocation7 + $0x40] sm:$0xff]  ;;  %p1091_p12 = por %p1090_p9, %p1089_p7 }
  0x75   : > { %873 = vmatprep.subr.bf16.mxu1 %v872_v57  ;;  %v884_v1 = vpack.c.bf16 %v286_v0, %v285_v63  ;;  %v289_v17 = vld [vmem:[#allocation7 + $0x50] sm:$0xff]  ;;  %v291_v20 = vld [vmem:[#allocation7 + $0x60] sm:$0xff] }
  0x76   : > { %875 = vmatpush3.bf16.msra.mxu1 %v872_v57  ;;  %v293_v23 = vld [vmem:[#allocation7 + $0x70] sm:$0xff]  ;;  %p1092_p1 = pnand %p1091_p12, %p1085_p3 }
  0x77   : > { %851 = vmatpush3.bf16.msra.mxu0 %v848_v8  ;;  %877 = vmatprep.subr.bf16.mxu1 %v876_v59 }
  0x78   : > { %853 = vmatprep.subr.bf16.mxu0 %v852_v12 }
  0x7a   : > { %879 = vmatpush3.bf16.msra.mxu1 %v876_v59 }
  0x7b   : > { %855 = vmatpush3.bf16.msra.mxu0 %v852_v12  ;;  %881 = vmatprep.subr.bf16.mxu1 %v880_v62 }
  0x7c   : > { %857 = vmatprep.subr.bf16.mxu0 %v856_v15 }
  0x7e   : > { %883 = vmatpush3.bf16.msra.mxu1 %v880_v62 }
  0x7f   : > { %859 = vmatpush3.bf16.msra.mxu0 %v856_v15  ;;  %885 = vmatprep.subr.bf16.mxu1 %v884_v1  ;;  %v288_v15 = vld [vmem:[#allocation7 + $0x48] sm:$0xff] }
  0x80   : > { %861 = vmatprep.subr.bf16.mxu0 %v860_v18  ;;  %v888_v16 = vpack.c.bf16 %v288_v15, %v287_v14 }
  0x82   : > { %887 = vmatpush3.bf16.msra.mxu1 %v884_v1 }
  0x83   : > { %863 = vmatpush3.bf16.msra.mxu0 %v860_v18  ;;  %889 = vmatprep.subr.bf16.mxu1 %v888_v16  ;;  %v290_v18 = vld [vmem:[#allocation7 + $0x58] sm:$0xff] }
  0x84   : > { %865 = vmatprep.subr.bf16.mxu0 %v864_v21  ;;  %v892_v19 = vpack.c.bf16 %v290_v18, %v289_v17 }
  0x86   : > { %891 = vmatpush3.bf16.msra.mxu1 %v888_v16 }
  0x87   : > { %867 = vmatpush3.bf16.msra.mxu0 %v864_v21  ;;  %893 = vmatprep.subr.bf16.mxu1 %v892_v19  ;;  %v292_v21 = vld [vmem:[#allocation7 + $0x68] sm:$0xff] }
  0x88   : > { %869 = vmatprep.subr.bf16.mxu0 %v868_v24  ;;  %v896_v22 = vpack.c.bf16 %v292_v21, %v291_v20 }
  0x8a   : > { %895 = vmatpush3.bf16.msra.mxu1 %v892_v19 }
  0x8b   : > { %871 = vmatpush3.bf16.msra.mxu0 %v868_v24  ;;  %v294_v24 = vld [vmem:[#allocation7 + $0x78] sm:$0xff]  ;;  %897 = vmatprep.subr.bf16.mxu1 %v896_v22 }
  0x8e   : > { %797 = vmatmul.mubr.f32.vlgmr.msra.gmra.mrb[0].mxu0 %v260_v25  ;;  %v900_v25 = vpack.c.bf16 %v294_v24, %v293_v23  ;;  %899 = vmatpush3.bf16.msra.mxu1 %v896_v22 }
  0x8f   : > { %799 = vmatprep.mubr.f32.mxu0 %v261_v26 }
  0x90   : > { %901 = vmatprep.subr.bf16.mxu1 %v900_v25 }
  0x92   : > { %800 = vmatmul.mubr.f32.gmra.mrb[2].mxu0 %v262_v27  ;;  %903 = vmatpush3.bf16.msra.mxu1 %v900_v25 }
 0x161   : > { %v798_v30 = vpop.f32.mrb[0].mxu0 }
 0x162   : > { %v361_v31 = vpop.f32.mrb[1].mxu0  ;;  %v384_v35 = vsel %vm382_vm0, %v798_v30, -inf }
 0x163   : > { %v383_v32 = vsel %vm382_vm0, %v361_v31, -inf }
 0x164   : > { %387 = vmax.xlane.f32.xlu0 %v383_v32 }
 0x165   : > { %v801_v33 = vpop.f32.mrb[2].mxu0 }
 0x166   : > { %v371_v34 = vpop.f32.mrb[3].mxu0  ;;  %v386_v37 = vsel %vm382_vm0, %v801_v33, -inf }
 0x167   : > { %v385_v36 = vsel %vm382_vm0, %v371_v34, -inf }
 0x168   : > { %389 = vmax.xlane.f32.xlu0 %v384_v35  ;;  %391 = vmax.xlane.f32.xlu1 %v385_v36 }
 0x16c   : > { %393 = vmax.xlane.f32.xlu1 %v386_v37 }
 0x1f1   : > { %v388_v38 = vpop.xlane.xlu0 %387 }
 0x1f2   : > { %v395_v39 = vsub.f32 %v383_v32, %v388_v38 }
 0x1f4   : > { %v399_v40 = vmul.f32 1.442695, %v395_v39 }
 0x1f5   : > { %v390_v41 = vpop.xlane.xlu0 %389  ;;  %v392_v42 = vpop.xlane.xlu1 %391 }
 0x1f6   : > { %980 = vpow2.f32 %v399_v40  ;;  %v396_v43 = vsub.f32 %v384_v35, %v390_v41  ;;  %v397_v44 = vsub.f32 %v385_v36, %v392_v42 }
 0x1f8   : > { %v401_v45 = vmul.f32 1.442695, %v396_v43  ;;  %v403_v46 = vmul.f32 1.442695, %v397_v44 }
 0x1f9   : > { %v394_v47 = vpop.xlane.xlu1 %393 }
 0x1fa   : > { %982 = vpow2.f32 %v401_v45  ;;  %v398_v48 = vsub.f32 %v386_v37, %v394_v47 }
 0x1fb   : > { %984 = vpow2.f32 %v403_v46 }
 0x1fc   : > { %v405_v49 = vmul.f32 1.442695, %v398_v48 }
 0x1fe   : > { %986 = vpow2.f32 %v405_v49 }
 0x200   : > { %v981_v50 = vpop.eup %980 }
 0x201   : > { %407 = vadd.xlane.f32.xlu0 %v981_v50 }
 0x204   : > { %v983_v51 = vpop.eup %982 }
 0x205   : > { %v985_v52 = vpop.eup %984  ;;  %409 = vadd.xlane.f32.xlu1 %v983_v51 }
 0x206   : > { %411 = vadd.xlane.f32.xlu0 %v985_v52 }
 0x208   : > { %v987_v53 = vpop.eup %986 }
 0x209   : > { %413 = vadd.xlane.f32.xlu1 %v987_v53 }
 0x28e   : > { %v408_v2 = vpop.xlane.xlu0 %407 }
 0x28f   : > { %v415_v3 = vmul.f32 0.0025, %v408_v2 }
 0x291   : > { %vm419_vm1 = vcmp.gt.f32.partialorder %v981_v50, %v415_v3 }
 0x292   : > { %v410_v4 = vpop.xlane.xlu1 %409  ;;  %v423_v5 = vsel %vm419_vm1, %v981_v50, 0.0 }
 0x293   : > { %v412_v6 = vpop.xlane.xlu0 %411  ;;  %v416_v7 = vmul.f32 0.0025, %v410_v4  ;;  %427 = vadd.xlane.f32.xlu0 %v423_v5 }
 0x294   : > { %v417_v8 = vmul.f32 0.0025, %v412_v6 }
 0x295   : > { %vm420_vm2 = vcmp.gt.f32.partialorder %v983_v51, %v416_v7 }
 0x296   : > { %v414_v9 = vpop.xlane.xlu1 %413  ;;  %vm421_vm3 = vcmp.gt.f32.partialorder %v985_v52, %v417_v8  ;;  %v424_v10 = vsel %vm420_vm2, %v983_v51, 0.0 }
 0x297   : > { %v418_v11 = vmul.f32 0.0025, %v414_v9  ;;  %v425_v12 = vsel %vm421_vm3, %v985_v52, 0.0  ;;  %429 = vadd.xlane.f32.xlu1 %v424_v10 }
 0x298   : > { %431 = vadd.xlane.f32.xlu0 %v425_v12 }
 0x299   : > { %vm422_vm4 = vcmp.gt.f32.partialorder %v987_v53, %v418_v11 }
 0x29a   : > { %v426_v13 = vsel %vm422_vm4, %v987_v53, 0.0 }
 0x29b   : > { %433 = vadd.xlane.f32.xlu1 %v426_v13 }
 0x320   : > { %v428_v26 = vpop.xlane.xlu0 %427 }
 0x321   : > { %v435_v27 = vmax.f32 %v428_v26, 1e-12 }
 0x323   : > { %988 = vrcp.f32 %v435_v27 }
 0x324   : > { %v430_v28 = vpop.xlane.xlu1 %429 }
 0x325   : > { %v432_v29 = vpop.xlane.xlu0 %431  ;;  %v436_v30 = vmax.f32 %v430_v28, 1e-12 }
 0x326   : > { %v437_v31 = vmax.f32 %v432_v29, 1e-12 }
 0x327   : > { %990 = vrcp.f32 %v436_v30 }
 0x328   : > { %992 = vrcp.f32 %v437_v31  ;;  %v434_v32 = vpop.xlane.xlu1 %433 }
 0x329   : > { %v438_v33 = vmax.f32 %v434_v32, 1e-12 }
 0x32b   : > { %994 = vrcp.f32 %v438_v33 }
 0x32d   : > { %v989_v34 = vpop.eup %988 }
 0x32e   : > { %v443_v35 = vmul.f32 %v989_v34, %v423_v5 }
 0x330   : > { %447 = vst [vmem:[%s255_s21] sm:$0xff] %v443_v35  ;;  %834 = vmatprep.mubr.f32.mxu1 %v443_v35 }
 0x331   : > { %v991_v36 = vpop.eup %990 }
 0x332   : > { %v993_v37 = vpop.eup %992  ;;  %v444_v38 = vmul.f32 %v991_v36, %v424_v10 }
 0x333   : > { %v445_v39 = vmul.f32 %v993_v37, %v425_v12 }
 0x334   : > { %448 = vst [vmem:[%s255_s21 + $0x8] sm:$0xff] %v444_v38  ;;  %835 = vmatmul.mubr.f32.vlgmr.msra.gmra.mrb[0].mxu1 %v444_v38 }
 0x335   : > { %v995_v40 = vpop.eup %994  ;;  %449 = vst [vmem:[%s255_s21 + $0x10] sm:$0xff] %v445_v39  ;;  %837 = vmatprep.mubr.f32.mxu1 %v445_v39 }
 0x336   : > { %v446_v41 = vmul.f32 %v995_v40, %v426_v13 }
 0x338   : > { %450 = vst [vmem:[%s255_s21 + $0x18] sm:$0xff] %v446_v41  ;;  %838 = vmatmul.mubr.f32.gmra.mrb[2].mxu1 %v446_v41 }
 0x339   : > { %1095 = shalt.err (!%p1092_p1)
}
 0x33a   : > { %s1096_s5 = scalar_lea.hbm %s1431_s6, 512  ;;  %s1100_s24 = scalar_lea.hbm %s1519_s4, 1024 }
 0x33b   : > { %p1097_p13 = scmp.ne.s32.totalorder %s1431_s6, %s1096_s5  ;;  %p1101_p4 = scmp.lt.u32.totalorder %s1431_s6, %s1519_s4 }
 0x33c   : > { %p1102_p5 = scmp.lt.u32.totalorder %s1100_s24, %s1096_s5  ;;  %p1104_p11 = scmp.lt.u32.totalorder %s1096_s5, %s1431_s6 }
 0x33d   : > { %p1098_p6 = pnand %p1097_p13, %p1533_p0 }
 0x33e   : > { %p1103_p8 = por %p1102_p5, %p1101_p4 }
 0x33f   : > { %p1099_p10 = pneg %p1098_p6 }
 0x340   : > { %p1105_p2 = por %p1104_p11, %p1103_p8 }
 0x342   : > { %p1106_p3 = pnand %p1105_p2, %p1099_p10 }
 0x344   : > { %1109 = shalt.err (!%p1106_p3)
}
 0x345   : > { %s1192_s30 = smov 128   ;;  %s1193_s28 = smov 8  }
 0x346   : > { %915 = dma.vmem_to_hbm [thread:$0]  (%p1533_p0), %s1424_s23, 512, %s1431_s6, %s546_s7, %s1192_s30, %s1192_s30, %s1193_s28  }
 0x347   : > { %s248_s27 = scalar_lea.vmem [#allocation8], %s1404_s10  ;;  %s1468_s9 = scalar_lea.hbm %s1518_s3, %s722_s11 }
 0x348   : > { %s559_s20 = sshll.u32 %s248_s27, 4  ;;  %s541_s10 = scalar_lea.sflag [#allocation4], %s1401_s8  ;;  %s1461_s20 = int_to_ptr.vmem [resolvable:$true] %s559_s20 }
 0x349   : > { %s1110_s23 = scalar_lea.vmem %s1461_s20, 512  ;;  %s1194_s6 = smov [#allocation8]  }
 0x34a   : > { %p1111_p7 = scmp.ne.s32.totalorder %s1461_s20, %s1110_s23  ;;  %s1114_s7 = sshll.u32 %s1194_s6, 4  ;;  %s1115_s7 = int_to_ptr.vmem [resolvable:$false] %s1114_s7 }
 0x34b   : > { %s1116_s25 = scalar_lea.vmem %s1115_s7, 1024  ;;  %p1117_p1 = scmp.lt.s32.totalorder %s1461_s20, %s1115_s7 }
 0x34c   : > { %p1112_p9 = pnand %p1111_p7, %p1533_p0  ;;  %p1118_p13 = scmp.lt.s32.totalorder %s1116_s25, %s1110_s23 }
 0x34e   : > { %p1113_p12 = pneg %p1112_p9  ;;  %p1119_p6 = por %p1118_p13, %p1117_p1 }
 0x350   : > { %p1120_p10 = pnand %p1119_p6, %p1113_p12 }
 0x407   : > { %v836_v42 = vpop.f32.mrb[0].mxu1 }
 0x408   : > { %537 = vst [vmem:[%s248_s27 + $0x8] sm:$0xff] %v836_v42  ;;  %v517_v43 = vpop.f32.mrb[1].mxu1 }
 0x409   : > { %536 = vst [vmem:[%s248_s27] sm:$0xff] %v517_v43 }
 0x40b   : > { %v839_v44 = vpop.f32.mrb[2].mxu1 }
 0x40c   : > { %539 = vst [vmem:[%s248_s27 + $0x18] sm:$0xff] %v839_v44  ;;  %v527_v45 = vpop.f32.mrb[3].mxu1 }
 0x40d   : > { %538 = vst [vmem:[%s248_s27 + $0x10] sm:$0xff] %v527_v45 }
 0x40e   : > { %1123 = shalt.err (!%p1120_p10)
}
 0x40f   : > { %s1124_s19 = scalar_lea.hbm %s1468_s9, 512  ;;  %s1128_s21 = scalar_lea.hbm %s1518_s3, 1024 }
 0x410   : > { %p1125_p4 = scmp.ne.s32.totalorder %s1468_s9, %s1124_s19  ;;  %p1129_p11 = scmp.lt.u32.totalorder %s1468_s9, %s1518_s3 }
 0x411   : > { %p1130_p2 = scmp.lt.u32.totalorder %s1128_s21, %s1124_s19  ;;  %p1132_p7 = scmp.lt.u32.totalorder %s1124_s19, %s1468_s9 }
 0x412   : > { %p1126_p5 = pnand %p1125_p4, %p1533_p0 }
 0x413   : > { %p1131_p3 = por %p1130_p2, %p1129_p11 }
 0x414   : > { %p1127_p8 = pneg %p1126_p5 }
 0x415   : > { %p1133_p9 = por %p1132_p7, %p1131_p3 }
 0x417   : > { %p1134_p12 = pnand %p1133_p9, %p1127_p8 }
 0x419   : > { %1137 = shalt.err (!%p1134_p12)
}
 0x41a   : > { %914 = dma.vmem_to_hbm [thread:$0]  (%p1533_p0), %s1461_s20, 512, %s1468_s9, %s541_s10, %s1192_s30, %s1192_s30, %s1193_s28  }
 0x41b PF: > { %s590_s29 = sand.u32 1, %s1172_s15   ;;  %p1534_p1 = scmp.ne.s32.totalorder %s1524_s22, 0 }
 0x41c   : > { %p1535_p13 = scmp.ge.s32.totalorder %s1184_s18, 2  ;;  %s591_s5 = scalar_lea.sflag [#allocation4], %s590_s29 }
 0x41e   : > { %p930_p6 = pnand %p1535_p13, %p1534_p1 }
 0x420   : > { %1163 = dma.done.wait (!%p930_p6), %s591_s5, 512  }
 0x421   : > { %1165 = vsyncadd (!%p930_p6), %s591_s5, 4294966784  ;;  %s600_s13 = scalar_lea.sflag [#allocation10], %s590_s29 }
 0x422   : > { %1167 = dma.done.wait (!%p930_p6), %s600_s13, 512  }
 0x423   : > { %1169 = vsyncadd (!%p930_p6), %s600_s13, 4294966784  ;;  %p22_p0 = scmp.ge.s32.totalorder %s1336_s26, 4   ;;  %s1536_s15 = smov %s1176_s16 }
 0x424   : > { %s1537_s16 = smov %s1180_s17  ;;  %s1538_s17 = smov %s1352_s14 }
 0x425   : > { %s1539_s18 = smov %s1336_s26  ;;  %24 = sbr.rel (!%p22_p0) target bundleno = 8 (0x8), region = 102 }
 0x42c   :  { %605 = vsyncpa [#allocation3], 1 }
 0x42d   :  { %607 = vsyncpa [#allocation3 + $0x1], 1 }
 0x42e   :  { %608 = vsyncpa [#allocation6], 1 }
 0x42f   :  { %609 = vsyncpa [#allocation4], 1 }
 0x430   :  { %611 = vsyncpa [#allocation4 + $0x1], 1 }
 0x431   :  { %612 = vsyncpa [#allocation10], 1 }
 0x432   :  { %614 = vsyncpa [#allocation10 + $0x1], 1 }

</bundles_post_ra>
